<compile_context>
chip_gen: v7x
topology: tpu7x:2x2x1
jax: 0.10.0
libtpu: 0.0.40
codegen_flags: <defaults>
</compile_context>

<pallas_src>
import functools

import jax
import jax.numpy as jnp
import numpy as np
from jax.experimental import pallas as pl
from jax.experimental.pallas import tpu as pltpu

EPS = 1e-5


# ---------------------------------------------------------------------------
# In-kernel helpers / kernel bodies
# ---------------------------------------------------------------------------
def _conv3x3_packed(x, w_ref, tmask, bmask):
    """3x3 conv of a packed (M, WC) f32 tile against banded bf16 weights.

    x      : (M, WC) f32 activation tile (M = whole images, multiple of H)
    w_ref  : (3*WC, WC) bf16 banded weights, kh-major row blocks
    tmask  : (M, 1) f32, 0.0 on rows with h == 0      (top of an image)
    bmask  : (M, 1) f32, 0.0 on rows with h == H - 1  (bottom of an image)
    returns: (M, WC) f32
    """
    M, WC = x.shape
    # kh = 0 / 2 taps read rows h-1 / h+1: XLU sublane roll + boundary mask
    # (rolls stay inside the tile because tiles cover whole images).
    up = pltpu.roll(x, 1, 0) * tmask
    down = pltpu.roll(x, M - 1, 0) * bmask
    # Three accumulated MXU dots against static views of the weight ref;
    # bf16 operands, f32 accumulation.
    acc = jnp.dot(up.astype(jnp.bfloat16), w_ref[0:WC, :],
                  preferred_element_type=jnp.float32)
    acc += jnp.dot(x.astype(jnp.bfloat16), w_ref[WC:2 * WC, :],
                   preferred_element_type=jnp.float32)
    acc += jnp.dot(down.astype(jnp.bfloat16), w_ref[2 * WC:3 * WC, :],
                   preferred_element_type=jnp.float32)
    return acc


def _store_partial_stats(y, s_ref, ss_ref):
    # Per-lane partial BN stats in f32; the per-channel reduction (over W and
    # over tiles) happens on tiny tensors in the wrapper -> no MXU, no XLU
    # group-sum matmul inside the kernel.
    s_ref[...] = jnp.sum(y, axis=0, keepdims=True).reshape(1, 1, -1)
    ss_ref[...] = jnp.sum(y * y, axis=0, keepdims=True).reshape(1, 1, -1)


def conv1_kernel(x_ref, w_ref, tmask_ref, bmask_ref, y_ref, s_ref, ss_ref):
    """Pass 1: conv1 + per-tile partial BN stats."""
    y = _conv3x3_packed(x_ref[...], w_ref, tmask_ref[...], bmask_ref[...])
    y_ref[...] = y
    _store_partial_stats(y, s_ref, ss_ref)


def bn_relu_conv2_kernel(y1_ref, sc_ref, sh_ref, w_ref, tmask_ref, bmask_ref,
                         y_ref, s_ref, ss_ref):
    """Pass 2: bn1 (apply global scale/shift) + ReLU + conv2 + partial stats."""
    out1 = jnp.maximum(y1_ref[...] * sc_ref[...] + sh_ref[...], 0.0)
    y = _conv3x3_packed(out1, w_ref, tmask_ref[...], bmask_ref[...])
    y_ref[...] = y
    _store_partial_stats(y, s_ref, ss_ref)


def bn_residual_relu_kernel(y2_ref, x_ref, sc_ref, sh_ref, o_ref):
    """Pass 3: bn2 (apply global scale/shift) + identity residual + ReLU."""
    o_ref[...] = jnp.maximum(
        y2_ref[...] * sc_ref[...] + sh_ref[...] + x_ref[...], 0.0)


# ---------------------------------------------------------------------------
# Wrapper-side weight / stats plumbing
# ---------------------------------------------------------------------------
def _band(w_kh, W):
    """(3, Cin, Cout) taps for one kh row -> (W*Cin, W*Cout) banded matrix.

    band[w_in*Cin + cin, w_out*Cout + cout] = w_kh[w_in - w_out + 1, cin, cout]
    when the kw index is in [0, 3); absent entries are zero, which implements
    the 1-pixel zero padding along W for free.
    """
    _, Cin, Cout = w_kh.shape
    M = jnp.zeros((W, Cin, W, Cout), w_kh.dtype)
    for kw in range(3):
        d = kw - 1                                   # w_in = w_out + d
        lo, hi = max(0, -d), min(W, W - d)
        w_out = jnp.arange(lo, hi)
        w_in = w_out + d
        M = M.at[w_in, :, w_out, :].set(
            jnp.broadcast_to(w_kh[kw], (hi - lo, Cin, Cout)))
    return M.reshape(W * Cin, W * Cout)


def _band_weights(w, W):
    """HWIO (3, 3, Cin, Cout) -> (3*W*Cin, W*Cout), kh-major row blocks."""
    return jnp.concatenate([_band(w[kh], W) for kh in range(3)], axis=0)


def _bn_scale_shift(s_tiles, ss_tiles, gamma, beta, n, W, C):
    """Per-tile per-lane partial sums -> global per-channel scale/shift (1, WC)."""
    s = jnp.sum(s_tiles, axis=(0, 1)).reshape(W, C).sum(axis=0)      # (C,)
    ss = jnp.sum(ss_tiles, axis=(0, 1)).reshape(W, C).sum(axis=0)    # (C,)
    mean = s / n
    var = jnp.maximum(ss / n - mean * mean, 0.0)   # clamp single-pass variance
    scale = gamma * jax.lax.rsqrt(var + EPS)
    shift = beta - mean * scale
    wc = W * C
    return (jnp.tile(scale, W).reshape(1, wc).astype(jnp.float32),
            jnp.tile(shift, W).reshape(1, wc).astype(jnp.float32))


def _pick_images_per_tile(B, H, target_rows=256):
    """Whole-image row tiles: halo-free kh taps; aim at >=256 rows for the MXU."""
    ipt = max(1, min(B, max(1, target_rows // H)))
    while B % ipt:
        ipt -= 1
    if (ipt * H) % 8:            # keep stores unmasked (sublane multiple of 8)
        ipt = B                  # fall back to a single full-size tile
    return ipt


# ---------------------------------------------------------------------------
# Public entry point
# ---------------------------------------------------------------------------
@functools.partial(jax.jit, static_argnames=("images_per_tile",))
def basic_block_pallas(x_nhwc, w1, g1, b1, w2, g2, b2, *, images_per_tile=None):
    """x_nhwc: (B, H, W, C); w*: (3, 3, C, C) HWIO; g*/b*: (C,)."""
    B, H, W, C = x_nhwc.shape
    BH, WC = B * H, W * C
    n = B * H * W                              # samples per channel for BN

    ipt = images_per_tile or _pick_images_per_tile(B, H)
    assert B % ipt == 0
    T, tm = B // ipt, ipt * H                  # grid size, rows per tile

    x2 = x_nhwc.reshape(BH, WC)                # pack W,C into the lane axis
    w1b = _band_weights(w1, W).astype(jnp.bfloat16)     # (3*WC, WC) bf16
    w2b = _band_weights(w2, W).astype(jnp.bfloat16)

    # Image top/bottom row masks for the kh = 0 / 2 taps.  Tiles cover whole
    # images, so one (tm, 1) mask is valid for every tile -> passed once as a
    # VMEM-resident input (hoisted out of the kernel body).
    hh = jnp.arange(tm, dtype=jnp.int32) % H
    tmask = (hh != 0).astype(jnp.float32).reshape(tm, 1)
    bmask = (hh != H - 1).astype(jnp.float32).reshape(tm, 1)

    cparams = pltpu.CompilerParams(
        dimension_semantics=("parallel",),          # megacore-shardable tiles
        vmem_limit_bytes=48 * 1024 * 1024)          # under v7x's 64 MiB VMEM

    tile_spec = pl.BlockSpec((tm, WC), lambda i: (i, 0))
    stat_spec = pl.BlockSpec((1, 1, WC), lambda i: (i, 0, 0))

    def res_spec(shape):                            # VMEM-resident across tiles
        return pl.BlockSpec(shape, lambda i, _n=len(shape): (0,) * _n)

    act_shape = jax.ShapeDtypeStruct((BH, WC), jnp.float32)
    stat_shape = jax.ShapeDtypeStruct((T, 1, WC), jnp.float32)

    def conv_call(kernel, extra_in_specs):
        return pl.pallas_call(
            kernel,
            grid_spec=pltpu.PrefetchScalarGridSpec(
                num_scalar_prefetch=0, grid=(T,),
                in_specs=list(extra_in_specs) + [
                    res_spec((3 * WC, WC)),         # banded weights (bf16)
                    res_spec((tm, 1)),              # top-row mask
                    res_spec((tm, 1)),              # bottom-row mask
                ],
                out_specs=[tile_spec, stat_spec, stat_spec]),
            out_shape=(act_shape, stat_shape, stat_shape),
            compiler_params=cparams)

    # Pass 1: conv1 + per-tile partial stats.
    y1, s1, ss1 = conv_call(conv1_kernel, [tile_spec])(x2, w1b, tmask, bmask)
    sc1, sh1 = _bn_scale_shift(s1, ss1, g1, b1, n, W, C)

    # Pass 2: bn1 + ReLU + conv2 + per-tile partial stats.
    y2, s2, ss2 = conv_call(
        bn_relu_conv2_kernel,
        [tile_spec, res_spec((1, WC)), res_spec((1, WC))],
    )(y1, sc1, sh1, w2b, tmask, bmask)
    sc2, sh2 = _bn_scale_shift(s2, ss2, g2, b2, n, W, C)

    # Pass 3: bn2 + identity residual + ReLU.
    out2d = pl.pallas_call(
        bn_residual_relu_kernel,
        grid_spec=pltpu.PrefetchScalarGridSpec(
            num_scalar_prefetch=0, grid=(T,),
            in_specs=[tile_spec, tile_spec, res_spec((1, WC)), res_spec((1, WC))],
            out_specs=tile_spec),
        out_shape=act_shape,
        compiler_params=cparams,
    )(y2, x2, sc2, sh2)

    return out2d.reshape(B, H, W, C)


# ---------------------------------------------------------------------------
# Pure-JAX reference (PyTorch training-mode BN semantics) for validation
# ---------------------------------------------------------------------------
def basic_block_ref(x_nhwc, w1, g1, b1, w2, g2, b2):
    def conv(x, w):
        return jax.lax.conv_general_dilated(
            x, w, window_strides=(1, 1), padding='SAME',
            dimension_numbers=('NHWC', 'HWIO', 'NHWC'))

    def bn(x, g, b):
        mean = jnp.mean(x, axis=(0, 1, 2), keepdims=True)
        var = jnp.mean((x - mean) ** 2, axis=(0, 1, 2), keepdims=True)
        return (x - mean) * (g * jax.lax.rsqrt(var + EPS)) + b

    out = jax.nn.relu(bn(conv(x_nhwc, w1), g1, b1))
    out = bn(conv(out, w2), g2, b2) + x_nhwc
    return jax.nn.relu(out)


if __name__ == "__main__":
    # Small, module-consistent shapes: batch=2, inplanes=planes=8, spatial=16,
    # stride=1, downsample=None (identity residual).  W*C = 128 = one lane row.
    B, Cin, H, W = 2, 8, 16, 16
    planes = 8

    key = jax.random.PRNGKey(0)
    kx, kw1, kw2, kg1, kb1, kg2, kb2 = jax.random.split(key, 7)

    # PyTorch-convention NCHW input, transposed to NHWC for the kernel wrapper.
    x_nchw = jax.random.normal(kx, (B, Cin, H, W), dtype=jnp.float32)
    x_nhwc = jnp.transpose(x_nchw, (0, 2, 3, 1))

    # Deterministic weight init (kaiming-like std), HWIO layout for convs.
    std1 = (2.0 / (9 * Cin)) ** 0.5
    std2 = (2.0 / (9 * planes)) ** 0.5
    w1 = std1 * jax.random.normal(kw1, (3, 3, Cin, planes), dtype=jnp.float32)
    w2 = std2 * jax.random.normal(kw2, (3, 3, planes, planes), dtype=jnp.float32)
    g1 = 1.0 + 0.1 * jax.random.normal(kg1, (planes,), dtype=jnp.float32)
    b1 = 0.1 * jax.random.normal(kb1, (planes,), dtype=jnp.float32)
    g2 = 1.0 + 0.1 * jax.random.normal(kg2, (planes,), dtype=jnp.float32)
    b2 = 0.1 * jax.random.normal(kb2, (planes,), dtype=jnp.float32)

    # images_per_tile=1 -> a 2-step parallel grid at this toy shape so the
    # tiled two-pass BatchNorm path is exercised (auto-pick targets ~256 rows).
    out_nhwc = basic_block_pallas(x_nhwc, w1, g1, b1, w2, g2, b2,
                                  images_per_tile=1)
    out_nhwc = jax.block_until_ready(out_nhwc)
    out_nchw = jnp.transpose(out_nhwc, (0, 3, 1, 2))  # back to PyTorch NCHW

    ref_nhwc = basic_block_ref(x_nhwc, w1, g1, b1, w2, g2, b2)
    # Tolerance loosened vs the f32-MXU version: conv operands are now bf16.
    np.testing.assert_allclose(np.asarray(out_nhwc), np.asarray(ref_nhwc),
                               rtol=2e-2, atol=3e-2)

    print("KERNEL_OK")
</pallas_src>

<mosaic_0001>
module attributes {stable_mosaic.version = 11 : i64} {
  func.func @conv1_kernel(%arg0: i32, %arg1: memref<16x128xf32, #tpu.memory_space<vmem>>, %arg2: memref<384x128xbf16, #tpu.memory_space<vmem>>, %arg3: memref<16x1xf32, #tpu.memory_space<vmem>>, %arg4: memref<16x1xf32, #tpu.memory_space<vmem>>, %arg5: memref<16x128xf32, #tpu.memory_space<vmem>>, %arg6: memref<1x1x128xf32, #tpu.memory_space<vmem>>, %arg7: memref<1x1x128xf32, #tpu.memory_space<vmem>>) attributes {dimension_semantics = [#tpu.dimension_semantics<parallel>], iteration_bounds = array<i64: 2>, scalar_prefetch = 0 : i64, scratch_operands = 0 : i64, tpu.core_type = #tpu.core_type<tc>, window_params = [{transform_indices = @transform_0, window_bounds = array<i64: 16, 128>}, {pipeline_mode = #tpu.pipeline_mode<synchronous>, transform_indices = @transform_1, window_bounds = array<i64: 384, 128>}, {pipeline_mode = #tpu.pipeline_mode<synchronous>, transform_indices = @transform_2, window_bounds = array<i64: 16, 1>}, {pipeline_mode = #tpu.pipeline_mode<synchronous>, transform_indices = @transform_3, window_bounds = array<i64: 16, 1>}, {transform_indices = @transform_4, window_bounds = array<i64: 16, 128>}, {transform_indices = @transform_5, window_bounds = array<i64: 1, 1, 128>}, {transform_indices = @transform_6, window_bounds = array<i64: 1, 1, 128>}]} {
    %c0 = arith.constant 0 : index
    %c0_0 = arith.constant 0 : index
    %0 = vector.load %arg1[%c0, %c0_0] : memref<16x128xf32, #tpu.memory_space<vmem>>, vector<16x128xf32>
    %c0_1 = arith.constant 0 : index
    %c0_2 = arith.constant 0 : index
    %1 = vector.load %arg3[%c0_1, %c0_2] : memref<16x1xf32, #tpu.memory_space<vmem>>, vector<16x1xf32>
    %c0_3 = arith.constant 0 : index
    %c0_4 = arith.constant 0 : index
    %2 = vector.load %arg4[%c0_3, %c0_4] : memref<16x1xf32, #tpu.memory_space<vmem>>, vector<16x1xf32>
    %c1_i32 = arith.constant 1 : i32
    %3 = tpu.dynamic_rotate %0 by %c1_i32 dim 0 : vector<16x128xf32>, i32 -> vector<16x128xf32>
    %4 = vector.broadcast %1 : vector<16x1xf32> to vector<16x128xf32>
    %5 = arith.mulf %3, %4 : vector<16x128xf32>
    %c15_i32 = arith.constant 15 : i32
    %6 = tpu.dynamic_rotate %0 by %c15_i32 dim 0 : vector<16x128xf32>, i32 -> vector<16x128xf32>
    %7 = vector.broadcast %2 : vector<16x1xf32> to vector<16x128xf32>
    %8 = arith.mulf %6, %7 : vector<16x128xf32>
    %9 = arith.truncf %5 : vector<16x128xf32> to vector<16x128xbf16>
    %c0_5 = arith.constant 0 : index
    %c0_6 = arith.constant 0 : index
    %10 = vector.load %arg2[%c0_5, %c0_6] : memref<384x128xbf16, #tpu.memory_space<vmem>>, vector<128x128xbf16>
    %cst = arith.constant dense<0.000000e+00> : vector<16x128xf32>
    %11 = tpu.matmul %9, %10, %cst {dimension_numbers = #tpu.dot_dimension_numbers<[1], [0], [0], [1], [0, 0, 1, 1], [], []>} : vector<16x128xbf16>, vector<128x128xbf16>, vector<16x128xf32> -> vector<16x128xf32>
    %12 = arith.truncf %0 : vector<16x128xf32> to vector<16x128xbf16>
    %c128 = arith.constant 128 : index
    %c0_7 = arith.constant 0 : index
    %13 = vector.load %arg2[%c128, %c0_7] : memref<384x128xbf16, #tpu.memory_space<vmem>>, vector<128x128xbf16>
    %cst_8 = arith.constant dense<0.000000e+00> : vector<16x128xf32>
    %14 = tpu.matmul %12, %13, %cst_8 {dimension_numbers = #tpu.dot_dimension_numbers<[1], [0], [0], [1], [0, 0, 1, 1], [], []>} : vector<16x128xbf16>, vector<128x128xbf16>, vector<16x128xf32> -> vector<16x128xf32>
    %15 = arith.addf %11, %14 : vector<16x128xf32>
    %16 = arith.truncf %8 : vector<16x128xf32> to vector<16x128xbf16>
    %c256 = arith.constant 256 : index
    %c0_9 = arith.constant 0 : index
    %17 = vector.load %arg2[%c256, %c0_9] : memref<384x128xbf16, #tpu.memory_space<vmem>>, vector<128x128xbf16>
    %cst_10 = arith.constant dense<0.000000e+00> : vector<16x128xf32>
    %18 = tpu.matmul %16, %17, %cst_10 {dimension_numbers = #tpu.dot_dimension_numbers<[1], [0], [0], [1], [0, 0, 1, 1], [], []>} : vector<16x128xbf16>, vector<128x128xbf16>, vector<16x128xf32> -> vector<16x128xf32>
    %19 = arith.addf %15, %18 : vector<16x128xf32>
    %c0_11 = arith.constant 0 : index
    %c0_12 = arith.constant 0 : index
    %20 = vector.load %arg5[%c0_11, %c0_12] : memref<16x128xf32, #tpu.memory_space<vmem>>, vector<16x128xf32>
    tpu.vector_store %arg5[%c0_11, %c0_12], %19 {strides = array<i32>} : memref<16x128xf32, #tpu.memory_space<vmem>>, vector<16x128xf32>,
    %cst_13 = arith.constant dense<0.000000e+00> : vector<128xf32>
    %21 = vector.multi_reduction <add>, %19, %cst_13 [0] : vector<16x128xf32> to vector<128xf32>
    %22 = vector.shape_cast %21 : vector<128xf32> to vector<1x128xf32>
    %23 = vector.shape_cast %22 : vector<1x128xf32> to vector<1x1x128xf32>
    %c0_14 = arith.constant 0 : index
    %c0_15 = arith.constant 0 : index
    %c0_16 = arith.constant 0 : index
    %24 = vector.load %arg6[%c0_14, %c0_15, %c0_16] : memref<1x1x128xf32, #tpu.memory_space<vmem>>, vector<1x1x128xf32>
    tpu.vector_store %arg6[%c0_14, %c0_15, %c0_16], %23 {strides = array<i32>} : memref<1x1x128xf32, #tpu.memory_space<vmem>>, vector<1x1x128xf32>,
    %25 = arith.mulf %19, %19 : vector<16x128xf32>
    %cst_17 = arith.constant dense<0.000000e+00> : vector<128xf32>
    %26 = vector.multi_reduction <add>, %25, %cst_17 [0] : vector<16x128xf32> to vector<128xf32>
    %27 = vector.shape_cast %26 : vector<128xf32> to vector<1x128xf32>
    %28 = vector.shape_cast %27 : vector<1x128xf32> to vector<1x1x128xf32>
    %c0_18 = arith.constant 0 : index
    %c0_19 = arith.constant 0 : index
    %c0_20 = arith.constant 0 : index
    %29 = vector.load %arg7[%c0_18, %c0_19, %c0_20] : memref<1x1x128xf32, #tpu.memory_space<vmem>>, vector<1x1x128xf32>
    tpu.vector_store %arg7[%c0_18, %c0_19, %c0_20], %28 {strides = array<i32>} : memref<1x1x128xf32, #tpu.memory_space<vmem>>, vector<1x1x128xf32>,
    return
  }
  func.func @transform_0(%arg0: i32) -> (i32, i32) {
    %c0_i32 = arith.constant 0 : i32
    %c0_i32_0 = arith.constant 0 : i32
    return %arg0, %c0_i32 : i32, i32
  }
  func.func @transform_1(%arg0: i32) -> (i32, i32) {
    %c0_i32 = arith.constant 0 : i32
    %c0_i32_0 = arith.constant 0 : i32
    %c0_i32_1 = arith.constant 0 : i32
    return %c0_i32, %c0_i32_0 : i32, i32
  }
  func.func @transform_2(%arg0: i32) -> (i32, i32) {
    %c0_i32 = arith.constant 0 : i32
    %c0_i32_0 = arith.constant 0 : i32
    %c0_i32_1 = arith.constant 0 : i32
    return %c0_i32, %c0_i32_0 : i32, i32
  }
  func.func @transform_3(%arg0: i32) -> (i32, i32) {
    %c0_i32 = arith.constant 0 : i32
    %c0_i32_0 = arith.constant 0 : i32
    %c0_i32_1 = arith.constant 0 : i32
    return %c0_i32, %c0_i32_0 : i32, i32
  }
  func.func @transform_4(%arg0: i32) -> (i32, i32) {
    %c0_i32 = arith.constant 0 : i32
    %c0_i32_0 = arith.constant 0 : i32
    return %arg0, %c0_i32 : i32, i32
  }
  func.func @transform_5(%arg0: i32) -> (i32, i32, i32) {
    %c0_i32 = arith.constant 0 : i32
    %c0_i32_0 = arith.constant 0 : i32
    %c0_i32_1 = arith.constant 0 : i32
    return %arg0, %c0_i32, %c0_i32_0 : i32, i32, i32
  }
  func.func @transform_6(%arg0: i32) -> (i32, i32, i32) {
    %c0_i32 = arith.constant 0 : i32
    %c0_i32_0 = arith.constant 0 : i32
    %c0_i32_1 = arith.constant 0 : i32
    return %arg0, %c0_i32, %c0_i32_0 : i32, i32, i32
  }
}

module attributes {stable_mosaic.version = 11 : i64} {
  func.func @bn_relu_conv2_kernel(%arg0: i32, %arg1: memref<16x128xf32, #tpu.memory_space<vmem>>, %arg2: memref<1x128xf32, #tpu.memory_space<vmem>>, %arg3: memref<1x128xf32, #tpu.memory_space<vmem>>, %arg4: memref<384x128xbf16, #tpu.memory_space<vmem>>, %arg5: memref<16x1xf32, #tpu.memory_space<vmem>>, %arg6: memref<16x1xf32, #tpu.memory_space<vmem>>, %arg7: memref<16x128xf32, #tpu.memory_space<vmem>>, %arg8: memref<1x1x128xf32, #tpu.memory_space<vmem>>, %arg9: memref<1x1x128xf32, #tpu.memory_space<vmem>>) attributes {dimension_semantics = [#tpu.dimension_semantics<parallel>], iteration_bounds = array<i64: 2>, scalar_prefetch = 0 : i64, scratch_operands = 0 : i64, tpu.core_type = #tpu.core_type<tc>, window_params = [{transform_indices = @transform_0, window_bounds = array<i64: 16, 128>}, {pipeline_mode = #tpu.pipeline_mode<synchronous>, transform_indices = @transform_1, window_bounds = array<i64: 1, 128>}, {pipeline_mode = #tpu.pipeline_mode<synchronous>, transform_indices = @transform_2, window_bounds = array<i64: 1, 128>}, {pipeline_mode = #tpu.pipeline_mode<synchronous>, transform_indices = @transform_3, window_bounds = array<i64: 384, 128>}, {pipeline_mode = #tpu.pipeline_mode<synchronous>, transform_indices = @transform_4, window_bounds = array<i64: 16, 1>}, {pipeline_mode = #tpu.pipeline_mode<synchronous>, transform_indices = @transform_5, window_bounds = array<i64: 16, 1>}, {transform_indices = @transform_6, window_bounds = array<i64: 16, 128>}, {transform_indices = @transform_7, window_bounds = array<i64: 1, 1, 128>}, {transform_indices = @transform_8, window_bounds = array<i64: 1, 1, 128>}]} {
    %c0 = arith.constant 0 : index
    %c0_0 = arith.constant 0 : index
    %0 = vector.load %arg1[%c0, %c0_0] : memref<16x128xf32, #tpu.memory_space<vmem>>, vector<16x128xf32>
    %c0_1 = arith.constant 0 : index
    %c0_2 = arith.constant 0 : index
    %1 = vector.load %arg2[%c0_1, %c0_2] : memref<1x128xf32, #tpu.memory_space<vmem>>, vector<1x128xf32>
    %2 = vector.broadcast %1 : vector<1x128xf32> to vector<16x128xf32>
    %3 = arith.mulf %0, %2 : vector<16x128xf32>
    %c0_3 = arith.constant 0 : index
    %c0_4 = arith.constant 0 : index
    %4 = vector.load %arg3[%c0_3, %c0_4] : memref<1x128xf32, #tpu.memory_space<vmem>>, vector<1x128xf32>
    %5 = vector.broadcast %4 : vector<1x128xf32> to vector<16x128xf32>
    %6 = arith.addf %3, %5 : vector<16x128xf32>
    %cst = arith.constant 0.000000e+00 : f32
    %7 = vector.broadcast %cst : f32 to vector<16x128xf32>
    %8 = arith.maximumf %6, %7 : vector<16x128xf32>
    %c0_5 = arith.constant 0 : index
    %c0_6 = arith.constant 0 : index
    %9 = vector.load %arg5[%c0_5, %c0_6] : memref<16x1xf32, #tpu.memory_space<vmem>>, vector<16x1xf32>
    %c0_7 = arith.constant 0 : index
    %c0_8 = arith.constant 0 : index
    %10 = vector.load %arg6[%c0_7, %c0_8] : memref<16x1xf32, #tpu.memory_space<vmem>>, vector<16x1xf32>
    %c1_i32 = arith.constant 1 : i32
    %11 = tpu.dynamic_rotate %8 by %c1_i32 dim 0 : vector<16x128xf32>, i32 -> vector<16x128xf32>
    %12 = vector.broadcast %9 : vector<16x1xf32> to vector<16x128xf32>
    %13 = arith.mulf %11, %12 : vector<16x128xf32>
    %c15_i32 = arith.constant 15 : i32
    %14 = tpu.dynamic_rotate %8 by %c15_i32 dim 0 : vector<16x128xf32>, i32 -> vector<16x128xf32>
    %15 = vector.broadcast %10 : vector<16x1xf32> to vector<16x128xf32>
    %16 = arith.mulf %14, %15 : vector<16x128xf32>
    %17 = arith.truncf %13 : vector<16x128xf32> to vector<16x128xbf16>
    %c0_9 = arith.constant 0 : index
    %c0_10 = arith.constant 0 : index
    %18 = vector.load %arg4[%c0_9, %c0_10] : memref<384x128xbf16, #tpu.memory_space<vmem>>, vector<128x128xbf16>
    %cst_11 = arith.constant dense<0.000000e+00> : vector<16x128xf32>
    %19 = tpu.matmul %17, %18, %cst_11 {dimension_numbers = #tpu.dot_dimension_numbers<[1], [0], [0], [1], [0, 0, 1, 1], [], []>} : vector<16x128xbf16>, vector<128x128xbf16>, vector<16x128xf32> -> vector<16x128xf32>
    %20 = arith.truncf %8 : vector<16x128xf32> to vector<16x128xbf16>
    %c128 = arith.constant 128 : index
    %c0_12 = arith.constant 0 : index
    %21 = vector.load %arg4[%c128, %c0_12] : memref<384x128xbf16, #tpu.memory_space<vmem>>, vector<128x128xbf16>
    %cst_13 = arith.constant dense<0.000000e+00> : vector<16x128xf32>
    %22 = tpu.matmul %20, %21, %cst_13 {dimension_numbers = #tpu.dot_dimension_numbers<[1], [0], [0], [1], [0, 0, 1, 1], [], []>} : vector<16x128xbf16>, vector<128x128xbf16>, vector<16x128xf32> -> vector<16x128xf32>
    %23 = arith.addf %19, %22 : vector<16x128xf32>
    %24 = arith.truncf %16 : vector<16x128xf32> to vector<16x128xbf16>
    %c256 = arith.constant 256 : index
    %c0_14 = arith.constant 0 : index
    %25 = vector.load %arg4[%c256, %c0_14] : memref<384x128xbf16, #tpu.memory_space<vmem>>, vector<128x128xbf16>
    %cst_15 = arith.constant dense<0.000000e+00> : vector<16x128xf32>
    %26 = tpu.matmul %24, %25, %cst_15 {dimension_numbers = #tpu.dot_dimension_numbers<[1], [0], [0], [1], [0, 0, 1, 1], [], []>} : vector<16x128xbf16>, vector<128x128xbf16>, vector<16x128xf32> -> vector<16x128xf32>
    %27 = arith.addf %23, %26 : vector<16x128xf32>
    %c0_16 = arith.constant 0 : index
    %c0_17 = arith.constant 0 : index
    %28 = vector.load %arg7[%c0_16, %c0_17] : memref<16x128xf32, #tpu.memory_space<vmem>>, vector<16x128xf32>
    tpu.vector_store %arg7[%c0_16, %c0_17], %27 {strides = array<i32>} : memref<16x128xf32, #tpu.memory_space<vmem>>, vector<16x128xf32>,
    %cst_18 = arith.constant dense<0.000000e+00> : vector<128xf32>
    %29 = vector.multi_reduction <add>, %27, %cst_18 [0] : vector<16x128xf32> to vector<128xf32>
    %30 = vector.shape_cast %29 : vector<128xf32> to vector<1x128xf32>
    %31 = vector.shape_cast %30 : vector<1x128xf32> to vector<1x1x128xf32>
    %c0_19 = arith.constant 0 : index
    %c0_20 = arith.constant 0 : index
    %c0_21 = arith.constant 0 : index
    %32 = vector.load %arg8[%c0_19, %c0_20, %c0_21] : memref<1x1x128xf32, #tpu.memory_space<vmem>>, vector<1x1x128xf32>
    tpu.vector_store %arg8[%c0_19, %c0_20, %c0_21], %31 {strides = array<i32>} : memref<1x1x128xf32, #tpu.memory_space<vmem>>, vector<1x1x128xf32>,
    %33 = arith.mulf %27, %27 : vector<16x128xf32>
    %cst_22 = arith.constant dense<0.000000e+00> : vector<128xf32>
    %34 = vector.multi_reduction <add>, %33, %cst_22 [0] : vector<16x128xf32> to vector<128xf32>
    %35 = vector.shape_cast %34 : vector<128xf32> to vector<1x128xf32>
    %36 = vector.shape_cast %35 : vector<1x128xf32> to vector<1x1x128xf32>
    %c0_23 = arith.constant 0 : index
    %c0_24 = arith.constant 0 : index
    %c0_25 = arith.constant 0 : index
    %37 = vector.load %arg9[%c0_23, %c0_24, %c0_25] : memref<1x1x128xf32, #tpu.memory_space<vmem>>, vector<1x1x128xf32>
    tpu.vector_store %arg9[%c0_23, %c0_24, %c0_25], %36 {strides = array<i32>} : memref<1x1x128xf32, #tpu.memory_space<vmem>>, vector<1x1x128xf32>,
    return
  }
  func.func @transform_0(%arg0: i32) -> (i32, i32) {
    %c0_i32 = arith.constant 0 : i32
    %c0_i32_0 = arith.constant 0 : i32
    return %arg0, %c0_i32 : i32, i32
  }
  func.func @transform_1(%arg0: i32) -> (i32, i32) {
    %c0_i32 = arith.constant 0 : i32
    %c0_i32_0 = arith.constant 0 : i32
    %c0_i32_1 = arith.constant 0 : i32
    return %c0_i32, %c0_i32_0 : i32, i32
  }
  func.func @transform_2(%arg0: i32) -> (i32, i32) {
    %c0_i32 = arith.constant 0 : i32
    %c0_i32_0 = arith.constant 0 : i32
    %c0_i32_1 = arith.constant 0 : i32
    return %c0_i32, %c0_i32_0 : i32, i32
  }
  func.func @transform_3(%arg0: i32) -> (i32, i32) {
    %c0_i32 = arith.constant 0 : i32
    %c0_i32_0 = arith.constant 0 : i32
    %c0_i32_1 = arith.constant 0 : i32
    return %c0_i32, %c0_i32_0 : i32, i32
  }
  func.func @transform_4(%arg0: i32) -> (i32, i32) {
    %c0_i32 = arith.constant 0 : i32
    %c0_i32_0 = arith.constant 0 : i32
    %c0_i32_1 = arith.constant 0 : i32
    return %c0_i32, %c0_i32_0 : i32, i32
  }
  func.func @transform_5(%arg0: i32) -> (i32, i32) {
    %c0_i32 = arith.constant 0 : i32
    %c0_i32_0 = arith.constant 0 : i32
    %c0_i32_1 = arith.constant 0 : i32
    return %c0_i32, %c0_i32_0 : i32, i32
  }
  func.func @transform_6(%arg0: i32) -> (i32, i32) {
    %c0_i32 = arith.constant 0 : i32
    %c0_i32_0 = arith.constant 0 : i32
    return %arg0, %c0_i32 : i32, i32
  }
  func.func @transform_7(%arg0: i32) -> (i32, i32, i32) {
    %c0_i32 = arith.constant 0 : i32
    %c0_i32_0 = arith.constant 0 : i32
    %c0_i32_1 = arith.constant 0 : i32
    return %arg0, %c0_i32, %c0_i32_0 : i32, i32, i32
  }
  func.func @transform_8(%arg0: i32) -> (i32, i32, i32) {
    %c0_i32 = arith.constant 0 : i32
    %c0_i32_0 = arith.constant 0 : i32
    %c0_i32_1 = arith.constant 0 : i32
    return %arg0, %c0_i32, %c0_i32_0 : i32, i32, i32
  }
}

module attributes {stable_mosaic.version = 11 : i64} {
  func.func @bn_residual_relu_kernel(%arg0: i32, %arg1: memref<16x128xf32, #tpu.memory_space<vmem>>, %arg2: memref<16x128xf32, #tpu.memory_space<vmem>>, %arg3: memref<1x128xf32, #tpu.memory_space<vmem>>, %arg4: memref<1x128xf32, #tpu.memory_space<vmem>>, %arg5: memref<16x128xf32, #tpu.memory_space<vmem>>) attributes {dimension_semantics = [#tpu.dimension_semantics<parallel>], iteration_bounds = array<i64: 2>, scalar_prefetch = 0 : i64, scratch_operands = 0 : i64, tpu.core_type = #tpu.core_type<tc>, window_params = [{transform_indices = @transform_0, window_bounds = array<i64: 16, 128>}, {transform_indices = @transform_1, window_bounds = array<i64: 16, 128>}, {pipeline_mode = #tpu.pipeline_mode<synchronous>, transform_indices = @transform_2, window_bounds = array<i64: 1, 128>}, {pipeline_mode = #tpu.pipeline_mode<synchronous>, transform_indices = @transform_3, window_bounds = array<i64: 1, 128>}, {transform_indices = @transform_4, window_bounds = array<i64: 16, 128>}]} {
    %c0 = arith.constant 0 : index
    %c0_0 = arith.constant 0 : index
    %0 = vector.load %arg1[%c0, %c0_0] : memref<16x128xf32, #tpu.memory_space<vmem>>, vector<16x128xf32>
    %c0_1 = arith.constant 0 : index
    %c0_2 = arith.constant 0 : index
    %1 = vector.load %arg3[%c0_1, %c0_2] : memref<1x128xf32, #tpu.memory_space<vmem>>, vector<1x128xf32>
    %2 = vector.broadcast %1 : vector<1x128xf32> to vector<16x128xf32>
    %3 = arith.mulf %0, %2 : vector<16x128xf32>
    %c0_3 = arith.constant 0 : index
    %c0_4 = arith.constant 0 : index
    %4 = vector.load %arg4[%c0_3, %c0_4] : memref<1x128xf32, #tpu.memory_space<vmem>>, vector<1x128xf32>
    %5 = vector.broadcast %4 : vector<1x128xf32> to vector<16x128xf32>
    %6 = arith.addf %3, %5 : vector<16x128xf32>
    %c0_5 = arith.constant 0 : index
    %c0_6 = arith.constant 0 : index
    %7 = vector.load %arg2[%c0_5, %c0_6] : memref<16x128xf32, #tpu.memory_space<vmem>>, vector<16x128xf32>
    %8 = arith.addf %6, %7 : vector<16x128xf32>
    %cst = arith.constant 0.000000e+00 : f32
    %9 = vector.broadcast %cst : f32 to vector<16x128xf32>
    %10 = arith.maximumf %8, %9 : vector<16x128xf32>
    %c0_7 = arith.constant 0 : index
    %c0_8 = arith.constant 0 : index
    %11 = vector.load %arg5[%c0_7, %c0_8] : memref<16x128xf32, #tpu.memory_space<vmem>>, vector<16x128xf32>
    tpu.vector_store %arg5[%c0_7, %c0_8], %10 {strides = array<i32>} : memref<16x128xf32, #tpu.memory_space<vmem>>, vector<16x128xf32>,
    return
  }
  func.func @transform_0(%arg0: i32) -> (i32, i32) {
    %c0_i32 = arith.constant 0 : i32
    %c0_i32_0 = arith.constant 0 : i32
    return %arg0, %c0_i32 : i32, i32
  }
  func.func @transform_1(%arg0: i32) -> (i32, i32) {
    %c0_i32 = arith.constant 0 : i32
    %c0_i32_0 = arith.constant 0 : i32
    return %arg0, %c0_i32 : i32, i32
  }
  func.func @transform_2(%arg0: i32) -> (i32, i32) {
    %c0_i32 = arith.constant 0 : i32
    %c0_i32_0 = arith.constant 0 : i32
    %c0_i32_1 = arith.constant 0 : i32
    return %c0_i32, %c0_i32_0 : i32, i32
  }
  func.func @transform_3(%arg0: i32) -> (i32, i32) {
    %c0_i32 = arith.constant 0 : i32
    %c0_i32_0 = arith.constant 0 : i32
    %c0_i32_1 = arith.constant 0 : i32
    return %c0_i32, %c0_i32_0 : i32, i32
  }
  func.func @transform_4(%arg0: i32) -> (i32, i32) {
    %c0_i32 = arith.constant 0 : i32
    %c0_i32_0 = arith.constant 0 : i32
    return %arg0, %c0_i32 : i32, i32
  }
}

</mosaic_0001>

<bundles_post_ra>
// kernel: tile.23
= control target key start
LH: loop header
LB: loop body
LE: loop exit
PB: predicated region body
PF: predicated region fallthrough
CT: control target
= control target key end

     0   :  { %s28_s0 = inlined_call_operand.vmem [shape: f32[8], index: 0, kind: input, shape index: {}]   ;;  %s29_s1 = inlined_call_operand.vmem [shape: f32[16,8], index: 1, kind: output, shape index: {}]  }
   0x1   :  { %v4_v0 = vld [vmem:[%s28_s0] ss:$0 sm:$0xff] }
   0x2   :  { %5 = vst [vmem:[%s29_s1] sm:$0xff] %v4_v0  ;;  %8 = vst [vmem:[%s29_s1 + $0x8] sm:$0xff] %v4_v0 }

// kernel: tile.24
= control target key start
LH: loop header
LB: loop body
LE: loop exit
PB: predicated region body
PF: predicated region fallthrough
CT: control target
= control target key end

     0   :  { %s131_s10 = smov 120   ;;  %s132_s11 = smov 104   ;;  %vm3_vm0 = vcmask 64512   ;;  %vm9_vm1 = vcmask 1048512   ;;  %vm15_vm2 = vcmask 982912   ;;  %vm21_vm3 = vcmask 917312   ;;  %s207_s0 = inlined_call_operand.vmem [shape: f32[16,8], index: 0, kind: input, shape index: {}]   ;;  %s208_s1 = inlined_call_operand.vmem [shape: f32[1,128], index: 1, kind: output, shape index: {}]  }
   0x1   :  { %v101_v0 = vld [vmem:[%s207_s0 + $0xf] sm:$0x1]   ;;  %v103_v1 = vld [vmem:[%s207_s0 + $0xd] sm:$0x1]   ;;  %v102_v2 = vld [vmem:[%s207_s0 + $0xe] sm:$0x1]  }
   0x2   :  { %7 = vrot.lane.b32.xlu0 %v101_v0, %s131_s10  ;;  %19 = vrot.lane.b32.xlu1 %v103_v1, %s132_s11  ;;  %v104_v3 = vld [vmem:[%s207_s0 + $0xc] sm:$0x1]   ;;  %s133_s16 = smov 112   ;;  %s134_s17 = smov 96   ;;  %v105_v4 = vld [vmem:[%s207_s0 + $0xb] sm:$0x1]  }
   0x3   :  { %v106_v5 = vld [vmem:[%s207_s0 + $0xa] sm:$0x1]   ;;  %v2_v6 = vld [vmem:[%s207_s0] sm:$0x1]   ;;  %s135_s24 = smov 88   ;;  %s136_s25 = smov 80  }
   0x4   :  { %4 = vst.msk [vmem:[#allocation0] sm:$0x1] %vm3_vm0, %v2_v6   ;;  %v107_v7 = vld [vmem:[%s207_s0 + $0x9] sm:$0x1]   ;;  %v108_v8 = vld [vmem:[%s207_s0 + $0x8] sm:$0x1]  }
   0x5   :  { %s137_s30 = smov 72   ;;  %s138_s2 = smov 64   ;;  %v109_v9 = vld [vmem:[%s207_s0 + $0x7] sm:$0x1]   ;;  %v110_v10 = vld [vmem:[%s207_s0 + $0x6] sm:$0x1]  }
   0x6   :  { %13 = vrot.lane.b32.xlu0 %v102_v2, %s133_s16  ;;  %25 = vrot.lane.b32.xlu1 %v104_v3, %s134_s17  ;;  %s139_s7 = smov 56   ;;  %s140_s8 = smov 48   ;;  %v111_v11 = vld [vmem:[%s207_s0 + $0x5] sm:$0x1]   ;;  %v112_v12 = vld [vmem:[%s207_s0 + $0x4] sm:$0x1]  }
   0x7   :  { %s141_s13 = smov 40   ;;  %s142_s14 = smov 32   ;;  %v113_v13 = vld [vmem:[%s207_s0 + $0x3] sm:$0x1]   ;;  %v114_v14 = vld [vmem:[%s207_s0 + $0x2] sm:$0x1]  }
   0x8   :  { %s143_s19 = smov 24   ;;  %s144_s20 = smov 16   ;;  %v115_v15 = vld [vmem:[%s207_s0 + $0x1] sm:$0x1]   ;;  %vm27_vm4 = vcmask 851712   ;;  %vm33_vm5 = vcmask 786112  }
   0x9   :  { %s145_s0 = smov 8   ;;  %vm39_vm6 = vcmask 720512   ;;  %vm45_vm7 = vcmask 654912   ;;  %vm51_vm8 = vcmask 589312   ;;  %vm57_vm9 = vcmask 523712  }
   0xa   :  { %31 = vrot.lane.b32.xlu0 %v105_v4, %s135_s24  ;;  %37 = vrot.lane.b32.xlu1 %v106_v5, %s136_s25  ;;  %vm63_vm10 = vcmask 458112   ;;  %vm69_vm11 = vcmask 392512   ;;  %vm75_vm12 = vcmask 326912   ;;  %vm81_vm13 = vcmask 261312  }
   0xb   :  { %vm87_vm14 = vcmask 195712   ;;  %vm93_vm15 = vcmask 130112  }
   0xe   :  { %43 = vrot.lane.b32.xlu0 %v107_v7, %s137_s30  ;;  %49 = vrot.lane.b32.xlu1 %v108_v8, %s138_s2 }
  0x12   :  { %55 = vrot.lane.b32.xlu0 %v109_v9, %s139_s7  ;;  %61 = vrot.lane.b32.xlu1 %v110_v10, %s140_s8 }
  0x16   :  { %67 = vrot.lane.b32.xlu0 %v111_v11, %s141_s13  ;;  %73 = vrot.lane.b32.xlu1 %v112_v12, %s142_s14 }
  0x1a   :  { %79 = vrot.lane.b32.xlu0 %v113_v13, %s143_s19  ;;  %85 = vrot.lane.b32.xlu1 %v114_v14, %s144_s20 }
  0x1e   :  { %91 = vrot.lane.b32.xlu0 %v115_v15, %s145_s0 }
  0x74   :  { %v8_v16 = vpop.permute.xlu0 %7   ;;  %v20_v17 = vpop.permute.xlu1 %19  }
  0x75   :  { %10 = vst.msk [vmem:[#allocation0] sm:$0x1] %vm9_vm1, %v8_v16  }
  0x78   :  { %v14_v18 = vpop.permute.xlu0 %13   ;;  %v26_v19 = vpop.permute.xlu1 %25  }
  0x79   :  { %16 = vst.msk [vmem:[#allocation0] sm:$0x1] %vm15_vm2, %v14_v18  }
  0x7a   :  { %22 = vst.msk [vmem:[#allocation0] sm:$0x1] %vm21_vm3, %v20_v17  }
  0x7b   :  { %28 = vst.msk [vmem:[#allocation0] sm:$0x1] %vm27_vm4, %v26_v19  }
  0x7c   :  { %v32_v20 = vpop.permute.xlu0 %31   ;;  %v38_v21 = vpop.permute.xlu1 %37  }
  0x7d   :  { %34 = vst.msk [vmem:[#allocation0] sm:$0x1] %vm33_vm5, %v32_v20  }
  0x7e   :  { %40 = vst.msk [vmem:[#allocation0] sm:$0x1] %vm39_vm6, %v38_v21  }
  0x80   :  { %v44_v22 = vpop.permute.xlu0 %43   ;;  %v50_v23 = vpop.permute.xlu1 %49  }
  0x81   :  { %46 = vst.msk [vmem:[#allocation0] sm:$0x1] %vm45_vm7, %v44_v22  }
  0x82   :  { %52 = vst.msk [vmem:[#allocation0] sm:$0x1] %vm51_vm8, %v50_v23  }
  0x84   :  { %v56_v24 = vpop.permute.xlu0 %55   ;;  %v62_v25 = vpop.permute.xlu1 %61  }
  0x85   :  { %58 = vst.msk [vmem:[#allocation0] sm:$0x1] %vm57_vm9, %v56_v24  }
  0x86   :  { %64 = vst.msk [vmem:[#allocation0] sm:$0x1] %vm63_vm10, %v62_v25  }
  0x88   :  { %v68_v26 = vpop.permute.xlu0 %67   ;;  %v74_v27 = vpop.permute.xlu1 %73  }
  0x89   :  { %70 = vst.msk [vmem:[#allocation0] sm:$0x1] %vm69_vm11, %v68_v26  }
  0x8a   :  { %76 = vst.msk [vmem:[#allocation0] sm:$0x1] %vm75_vm12, %v74_v27  }
  0x8c   :  { %v80_v28 = vpop.permute.xlu0 %79   ;;  %v86_v29 = vpop.permute.xlu1 %85  }
  0x8d   :  { %82 = vst.msk [vmem:[#allocation0] sm:$0x1] %vm81_vm13, %v80_v28  }
  0x8e   :  { %88 = vst.msk [vmem:[#allocation0] sm:$0x1] %vm87_vm14, %v86_v29  }
  0x90   :  { %v92_v30 = vpop.permute.xlu0 %91  }
  0x91   :  { %94 = vst.msk [vmem:[#allocation0] sm:$0x1] %vm93_vm15, %v92_v30  }
  0x98   :  { %v98_v31 = vld [vmem:[#allocation0] sm:$0x1] }
  0x99   :  { %100 = vst [vmem:[%s208_s1] sm:$0x1] %v98_v31 }

// kernel: basic_block_pallas.5
= control target key start
LH: loop header
LB: loop body
LE: loop exit
PB: predicated region body
PF: predicated region fallthrough
CT: control target
= control target key end

     0   :  { %s375_s15 = smov 0   ;;  %s401_s0 = inlined_call_operand.vmem [shape: f32[32,128], index: 0, kind: input, shape index: {}]   ;;  %s402_s1 = inlined_call_operand.vmem [shape: f32[32,128], index: 1, kind: input, shape index: {}]   ;;  %s403_s2 = inlined_call_operand.vmem [shape: f32[1,128], index: 2, kind: input, shape index: {}]   ;;  %s404_s3 = inlined_call_operand.vmem [shape: f32[1,128], index: 3, kind: input, shape index: {}]   ;;  %s405_s4 = inlined_call_operand.vmem [shape: f32[32,128], index: 4, kind: output, shape index: {}]  }
   0x1 LB: > { %s319_s16 = sadd.s32 4294967295, %s348_s15   ;;  %p323_p0 = scmp.ge.s32.totalorder %s348_s15, 1  ;;  %s348_s15 = sphi %s375_s15, %s14_s15  }
   0x2   : > { %p174_p1 = scmp.lt.s32.totalorder %s348_s15, 3 }
   0x4   : > { %p175_p2 = pnand %p323_p0, %p174_p1 }
   0x5   : > { %s324_s17 = sshll.u32 (!%p175_p2), %s319_s16, 1  ;;  %v330_v0 = vld [vmem:[%s403_s2] ss:$0 sm:$0xff] (!%p175_p2) }
   0x6   : > { %178 = sbr.rel (%p175_p2) target bundleno = 26 (0x1a), region = 36  ;;  %p206_p3 = scmp.lt.s32.totalorder (!%p175_p2), %s324_s17, 3  ;;  %v331_v3 = vld [vmem:[%s404_s3] ss:$0 sm:$0xff] (!%p175_p2) }
   0xd   : > { %s407_s17 = smov (!%p206_p3, %s324_s17), 3 }
   0xe   : > { %s325_s18 = sshll.u32 %s407_s17, 3 }
   0xf   : > { %s209_s23 = scalar_lea.vmem %s401_s0, %s325_s18  ;;  %s215_s26 = scalar_lea.vmem %s402_s1, %s325_s18 }
  0x10   : > { %v223_v1 = vld [vmem:[%s209_s23] sm:$0xff]  ;;  %v224_v2 = vld [vmem:[%s209_s23 + $0x8] sm:$0xff]  ;;  %s221_s5 = scalar_lea.vmem %s405_s4, %s325_s18 }
  0x11   : > { %v232_v4 = vmul.f32 %v330_v0, %v223_v1  ;;  %v233_v5 = vmul.f32 %v330_v0, %v224_v2  ;;  %v243_v6 = vld [vmem:[%s215_s26] sm:$0xff]  ;;  %v244_v7 = vld [vmem:[%s215_s26 + $0x8] sm:$0xff] }
  0x13   : > { %v241_v8 = vadd.f32 %v331_v3, %v232_v4  ;;  %v242_v9 = vadd.f32 %v331_v3, %v233_v5 }
  0x15   : > { %v245_v10 = vadd.f32 %v243_v6, %v241_v8  ;;  %v246_v11 = vadd.f32 %v244_v7, %v242_v9 }
  0x17   : > { %v247_v12 = vmax.f32 %v245_v10, 0.0  ;;  %v248_v13 = vmax.f32 %v246_v11, 0.0 }
  0x19   : > { %249 = vst [vmem:[%s221_s5] sm:$0xff] %v247_v12  ;;  %250 = vst [vmem:[%s221_s5 + $0x8] sm:$0xff] %v248_v13 }
  0x1a PF: > { %s14_s15 = sadd.s32 1, %s348_s15  }
  0x1b   : > { %p11_p4 = scmp.ge.s32.totalorder %s14_s15, 4  }
  0x1d   :  { %13 = sbr.rel (!%p11_p4) target bundleno = 1 (0x1), region = 69 }

// kernel: basic_block_pallas.3
= control target key start
LH: loop header
LB: loop body
LE: loop exit
PB: predicated region body
PF: predicated region fallthrough
CT: control target
= control target key end

     0   :  { %s972_s21 = smov 0   ;;  %s1121_s0 = inlined_call_operand.vmem [shape: f32[32,128], index: 0, kind: input, shape index: {}]   ;;  %s1122_s1 = inlined_call_operand.vmem [shape: bf16[384,128], index: 1, kind: input, shape index: {}]   ;;  %s1123_s2 = inlined_call_operand.vmem [shape: f32[16,1], index: 2, kind: input, shape index: {}]   ;;  %s1124_s3 = inlined_call_operand.vmem [shape: f32[16,1], index: 3, kind: input, shape index: {}]   ;;  %s1125_s4 = inlined_call_operand.vmem [shape: f32[32,128], index: 4, kind: output, shape index: {0}]   ;;  %s1126_s5 = inlined_call_operand.vmem [shape: f32[2,1,128], index: 5, kind: output, shape index: {1}]   ;;  %s1127_s6 = inlined_call_operand.vmem [shape: f32[2,1,128], index: 6, kind: output, shape index: {2}]  }
   0x1 LB: > { %s978_s22 = sadd.s32 4294967295, %s932_s21   ;;  %p765_p0 = scmp.ge.s32.totalorder %s932_s21, 1  ;;  %s932_s21 = sphi %s972_s21, %s17_s21  }
   0x2   : > { %p218_p1 = scmp.lt.s32.totalorder %s932_s21, 3 }
   0x4   : > { %p219_p2 = pnand %p765_p0, %p218_p1 }
   0x5   : > { %v275_v0 = vld [vmem:[%s1123_s2] sm:$0xff] (!%p219_p2)  ;;  %v281_v2 = vlaneseq (!%p219_p2)  ;;  %s766_s27 = sshll.u32 (!%p219_p2), %s978_s22, 1  ;;  %v934_v3 = vmov (!%p219_p2), 0   ;;  %v276_v4 = vld [vmem:[%s1123_s2 + $0x8] sm:$0xff] (!%p219_p2)  ;;  %v935_v7 = vmov (!%p219_p2), 0.0   ;;  %v904_v10 = vld [vmem:[%s1122_s1 + $0x10] sm:$0xff] (!%p219_p2)  }
   0x6   : > { %222 = sbr.rel (%p219_p2) target bundleno = 408 (0x198), region = 36  ;;  %v277_v1 = vld [vmem:[%s1124_s3] sm:$0xff] (!%p219_p2)  ;;  %900 = vset.pattern.permute.xlu0 (!%p219_p2), %v934_v3  ;;  %901 = vset.pattern.permute.xlu1 (!%p219_p2), %v934_v3  ;;  %v278_v5 = vld [vmem:[%s1124_s3 + $0x8] sm:$0xff] (!%p219_p2)  ;;  %p255_p3 = scmp.lt.s32.totalorder (!%p219_p2), %s766_s27, 3  ;;  %vm936_vm1 = vmmov (!%p219_p2), 0   ;;  %v905_v18 = vld [vmem:[%s1122_s1 + $0x18] sm:$0xff] (!%p219_p2)  }
   0x7   : > { %288 = vperm.xlu0 (!%p219_p2), %900, %v275_v0   ;;  %305 = vperm.xlu1 (!%p219_p2), %901, %v277_v1   ;;  %v902_v6 = vld [vmem:[%s1122_s1] sm:$0xff] (!%p219_p2)   ;;  %v282_v8 = vshrl.u32 (!%p219_p2), %v281_v2, 7  ;;  %v903_v9 = vld [vmem:[%s1122_s1 + $0x8] sm:$0xff] (!%p219_p2)   ;;  %v914_v21 = vld [vmem:[%s1122_s1 + $0x50] sm:$0xff] (!%p219_p2)   ;;  %p266_p4 = scmp.lt.s32.totalorder (!%p219_p2), %s978_s22, 1 }
   0x8   : > { %843 = vmatprep.subr.bf16.mxu0 (!%p219_p2), %v935_v7  ;;  %823 = vmatprep.subr.bf16.mxu1 (!%p219_p2), %v935_v7  ;;  %v910_v17 = vld [vmem:[%s1122_s1 + $0x40] sm:$0xff] (!%p219_p2)   ;;  %v912_v19 = vld [vmem:[%s1122_s1 + $0x48] sm:$0xff] (!%p219_p2)   ;;  %v916_v23 = vld [vmem:[%s1122_s1 + $0x58] sm:$0xff] (!%p219_p2)  }
   0x9   : > { %844 = vmatpush3.bf16.msra.mxu0 (!%p219_p2), %v902_v6  ;;  %vm283_vm0 = vcmp.lt.s32.totalorder (!%p219_p2), %v282_v8, 1  ;;  %859 = vmatprep.mubr.msk.bf16.mxu0 (!%p219_p2), %vm936_vm1, %v935_v7  ;;  %v906_v20 = vld [vmem:[%s1122_s1 + $0x20] sm:$0xff] (!%p219_p2)   ;;  %v907_v22 = vld [vmem:[%s1122_s1 + $0x28] sm:$0xff] (!%p219_p2)   ;;  %v908_v24 = vld [vmem:[%s1122_s1 + $0x30] sm:$0xff] (!%p219_p2)   ;;  %vm300_vm2 = vcmp.lt.s32.totalorder (!%p219_p2), %v282_v8, 7 }
   0xa   : > { %845 = vmatprep.subr.bf16.mxu0 (!%p219_p2), %v935_v7  ;;  %839 = vmatprep.mubr.msk.bf16.mxu1 (!%p219_p2), %vm936_vm1, %v935_v7  ;;  %v918_v25 = vld [vmem:[%s1122_s1 + $0x60] sm:$0xff] (!%p219_p2)   ;;  %v909_v28 = vld [vmem:[%s1122_s1 + $0x38] sm:$0xff] (!%p219_p2)   ;;  %v920_v29 = vld [vmem:[%s1122_s1 + $0x68] sm:$0xff] (!%p219_p2)  }
   0xb   : > { %293 = vperm.xlu0 (!%p219_p2), %900, %v276_v4   ;;  %310 = vperm.xlu1 (!%p219_p2), %901, %v278_v5   ;;  %v922_v32 = vld [vmem:[%s1122_s1 + $0x70] sm:$0xff] (!%p219_p2)   ;;  %v924_v33 = vld [vmem:[%s1122_s1 + $0x78] sm:$0xff] (!%p219_p2)   ;;  %v911_v43 = vld [vmem:[%s1122_s1 + $0x80] sm:$0xff] (!%p219_p2)  }
   0xc   : > { %824 = vmatpush3.bf16.msra.mxu1 (!%p219_p2), %v910_v17  ;;  %v913_v46 = vld [vmem:[%s1122_s1 + $0x88] sm:$0xff] (!%p219_p2)   ;;  %v915_v47 = vld [vmem:[%s1122_s1 + $0x90] sm:$0xff] (!%p219_p2)   ;;  %v917_v48 = vld [vmem:[%s1122_s1 + $0x98] sm:$0xff] (!%p219_p2)  }
   0xd   : > { %s1129_s27 = smov (!%p255_p3, %s766_s27), 3  ;;  %846 = vmatpush3.bf16.msra.mxu0 %v903_v9  ;;  %825 = vmatprep.subr.bf16.mxu1 %v935_v7  ;;  %v919_v49 = vld [vmem:[%s1122_s1 + $0xa0] sm:$0xff]   ;;  %v921_v50 = vld [vmem:[%s1122_s1 + $0xa8] sm:$0xff]   ;;  %v923_v51 = vld [vmem:[%s1122_s1 + $0xb0] sm:$0xff]   ;;  %s1131_s22 = smov (!%p266_p4, %s978_s22), 1 }
   0xe   : > { %s767_s12 = sshll.u32 %s1129_s27, 3  ;;  %847 = vmatprep.subr.bf16.mxu0 %v935_v7  ;;  %v925_v52 = vld [vmem:[%s1122_s1 + $0xb8] sm:$0xff]   ;;  %s268_s25 = scalar_lea.vmem %s1126_s5, %s1131_s22 }
   0xf   : > { %s258_s15 = scalar_lea.vmem %s1121_s0, %s767_s12  ;;  %s264_s24 = scalar_lea.vmem %s1125_s4, %s767_s12 }
  0x10   : > { %v273_v11 = vld [vmem:[%s258_s15] sm:$0xff]  ;;  %v274_v12 = vld [vmem:[%s258_s15 + $0x8] sm:$0xff]  ;;  %826 = vmatpush3.bf16.msra.mxu1 %v912_v19  ;;  %s271_s29 = scalar_lea.vmem %s1127_s6, %s1131_s22 }
  0x11   : > { %v279_v13 = vrot.slane %v273_v11, 7  ;;  %v280_v14 = vrot.slane %v274_v12, 7  ;;  %848 = vmatpush3.bf16.msra.mxu0 %v904_v10  ;;  %827 = vmatprep.subr.bf16.mxu1 %v935_v7  ;;  %v298_v26 = vrot.slane %v273_v11, 1  ;;  %v299_v27 = vrot.slane %v274_v12, 1 }
  0x12   : > { %849 = vmatprep.subr.bf16.mxu0 %v935_v7  ;;  %v332_v34 = vpack.c.bf16 %v274_v12, %v273_v11 }
  0x13   : > { %v285_v15 = vsel %vm283_vm0, %v280_v14, %v279_v13  ;;  %v284_v16 = vsel %vm283_vm0, %v279_v13, %v280_v14  ;;  %v301_v30 = vsel %vm300_vm2, %v298_v26, %v299_v27  ;;  %v302_v31 = vsel %vm300_vm2, %v299_v27, %v298_v26 }
  0x14   : > { %828 = vmatpush3.bf16.msra.mxu1 %v914_v21 }
  0x15   : > { %850 = vmatpush3.bf16.msra.mxu0 %v905_v18  ;;  %829 = vmatprep.subr.bf16.mxu1 %v935_v7 }
  0x16   : > { %851 = vmatprep.subr.bf16.mxu0 %v935_v7 }
  0x18   : > { %830 = vmatpush3.bf16.msra.mxu1 %v916_v23 }
  0x19   : > { %852 = vmatpush3.bf16.msra.mxu0 %v906_v20  ;;  %831 = vmatprep.subr.bf16.mxu1 %v935_v7 }
  0x1a   : > { %853 = vmatprep.subr.bf16.mxu0 %v935_v7 }
  0x1c   : > { %832 = vmatpush3.bf16.msra.mxu1 %v918_v25 }
  0x1d   : > { %854 = vmatpush3.bf16.msra.mxu0 %v907_v22  ;;  %833 = vmatprep.subr.bf16.mxu1 %v935_v7 }
  0x1e   : > { %855 = vmatprep.subr.bf16.mxu0 %v935_v7 }
  0x20   : > { %834 = vmatpush3.bf16.msra.mxu1 %v920_v29 }
  0x21   : > { %856 = vmatpush3.bf16.msra.mxu0 %v908_v24  ;;  %835 = vmatprep.subr.bf16.mxu1 %v935_v7 }
  0x22   : > { %857 = vmatprep.subr.bf16.mxu0 %v935_v7 }
  0x24   : > { %836 = vmatpush3.bf16.msra.mxu1 %v922_v32 }
  0x25   : > { %858 = vmatpush3.bf16.msra.mxu0 %v909_v28  ;;  %837 = vmatprep.subr.bf16.mxu1 %v935_v7 }
  0x26   : > { %863 = vmatprep.subr.bf16.mxu0 %v935_v7 }
  0x28   : > { %838 = vmatpush3.bf16.msra.mxu1 %v924_v33 }
  0x2b   : > { %840 = vmatmul.mubr.bf16.vlgmr.msra.gmra.mrb[0].mxu1 %v332_v34 }
  0x86   : > { %v289_v35 = vpop.permute.xlu0 %288  ;;  %v306_v36 = vpop.permute.xlu1 %305 }
  0x87   : > { %v313_v37 = vmul.f32 %v306_v36, %v301_v30  ;;  %v296_v40 = vmul.f32 %v289_v35, %v285_v15 }
  0x8a   : > { %v294_v38 = vpop.permute.xlu0 %293  ;;  %v311_v39 = vpop.permute.xlu1 %310 }
  0x8b   : > { %v297_v41 = vmul.f32 %v294_v38, %v284_v16  ;;  %v314_v42 = vmul.f32 %v311_v39, %v302_v31 }
  0x8d   : > { %v315_v44 = vpack.c.bf16 %v297_v41, %v296_v40  ;;  %v527_v45 = vpack.c.bf16 %v314_v42, %v313_v37 }
  0x8f   : > { %860 = vmatmul.mubr.bf16.vlgmr.msra.gmra.mrb[0].mxu0 %v315_v44 }
  0x90   : > { %864 = vmatpush3.bf16.msra.mxu0 %v911_v43  ;;  %879 = vmatprep.mubr.msk.bf16.mxu0 %vm936_vm1, %v935_v7 }
  0x91   : > { %865 = vmatprep.subr.bf16.mxu0 %v935_v7 }
  0x94   : > { %866 = vmatpush3.bf16.msra.mxu0 %v913_v46 }
  0x95   : > { %867 = vmatprep.subr.bf16.mxu0 %v935_v7 }
  0x98   : > { %868 = vmatpush3.bf16.msra.mxu0 %v915_v47 }
  0x99   : > { %869 = vmatprep.subr.bf16.mxu0 %v935_v7 }
  0x9c   : > { %870 = vmatpush3.bf16.msra.mxu0 %v917_v48 }
  0x9d   : > { %871 = vmatprep.subr.bf16.mxu0 %v935_v7 }
  0xa0   : > { %872 = vmatpush3.bf16.msra.mxu0 %v919_v49 }
  0xa1   : > { %873 = vmatprep.subr.bf16.mxu0 %v935_v7 }
  0xa4   : > { %874 = vmatpush3.bf16.msra.mxu0 %v921_v50 }
  0xa5   : > { %875 = vmatprep.subr.bf16.mxu0 %v935_v7 }
  0xa8   : > { %876 = vmatpush3.bf16.msra.mxu0 %v923_v51 }
  0xa9   : > { %877 = vmatprep.subr.bf16.mxu0 %v935_v7 }
  0xac   : > { %878 = vmatpush3.bf16.msra.mxu0 %v925_v52 }
  0xaf   : > { %880 = vmatmul.mubr.bf16.vlgmr.msra.gmra.mrb[0].mxu0 %v527_v45 }
  0xfe   : > { %v431_v53 = vpop.f32.mrb[0].mxu1 }
  0xff   : > { %v841_v54 = vpop.f32.mrb[1].mxu1 }
 0x100   : > { %v434_v55 = vpop.f32.mrb[2].mxu1 }
 0x101   : > { %v842_v56 = vpop.f32.mrb[3].mxu1 }
 0x182   : > { %v626_v57 = vpop.f32.mrb[0].mxu0 }
 0x183   : > { %v883_v58 = vadd.f32 %v626_v57, %v431_v53  ;;  %v881_v59 = vpop.f32.mrb[1].mxu0 }
 0x184   : > { %v629_v60 = vpop.f32.mrb[2].mxu0 }
 0x185   : > { %635 = vst [vmem:[%s264_s24] sm:$0xff] %v883_v58  ;;  %v884_v61 = vadd.f32 %v629_v60, %v434_v55  ;;  %v882_v62 = vpop.f32.mrb[3].mxu0  ;;  %v645_v63 = vmul.f32 %v883_v58, %v883_v58 }
 0x187   : > { %636 = vst [vmem:[%s264_s24 + $0x8] sm:$0xff] %v884_v61  ;;  %v637_v0 = vadd.f32 %v884_v61, %v883_v58  ;;  %v646_v1 = vmul.f32 %v884_v61, %v884_v61 }
 0x189   : > { %v638_v2 = vrot.slane %v637_v0, 4  ;;  %v647_v3 = vadd.f32 %v646_v1, %v645_v63 }
 0x18b   : > { %v639_v4 = vadd.f32 %v638_v2, %v637_v0  ;;  %v648_v5 = vrot.slane %v647_v3, 4 }
 0x18d   : > { %v640_v6 = vrot.slane %v639_v4, 2  ;;  %v649_v7 = vadd.f32 %v648_v5, %v647_v3 }
 0x18f   : > { %v641_v8 = vadd.f32 %v640_v6, %v639_v4  ;;  %v650_v9 = vrot.slane %v649_v7, 2 }
 0x191   : > { %v642_v10 = vrot.slane %v641_v8, 1  ;;  %v651_v11 = vadd.f32 %v650_v9, %v649_v7 }
 0x193   : > { %v643_v12 = vadd.f32 %v642_v10, %v641_v8  ;;  %v652_v13 = vrot.slane %v651_v11, 1 }
 0x195   : > { %644 = vst [vmem:[%s268_s25] sm:$0x1] %v643_v12  ;;  %v653_v14 = vadd.f32 %v652_v13, %v651_v11 }
 0x197   : > { %654 = vst [vmem:[%s271_s29] sm:$0x1] %v653_v14 }
 0x198 PF: > { %s17_s21 = sadd.s32 1, %s932_s21  }
 0x199   : > { %p14_p5 = scmp.ge.s32.totalorder %s17_s21, 4  }
 0x19b   :  { %16 = sbr.rel (!%p14_p5) target bundleno = 1 (0x1), region = 90 }

// kernel: basic_block_pallas.4
= control target key start
LH: loop header
LB: loop body
LE: loop exit
PB: predicated region body
PF: predicated region fallthrough
CT: control target
= control target key end

     0   :  { %s1058_s27 = smov 0   ;;  %s1213_s0 = inlined_call_operand.vmem [shape: f32[32,128], index: 0, kind: input, shape index: {}]   ;;  %s1214_s1 = inlined_call_operand.vmem [shape: f32[1,128], index: 1, kind: input, shape index: {}]   ;;  %s1215_s2 = inlined_call_operand.vmem [shape: f32[1,128], index: 2, kind: input, shape index: {}]   ;;  %s1216_s3 = inlined_call_operand.vmem [shape: bf16[384,128], index: 3, kind: input, shape index: {}]   ;;  %s1217_s4 = inlined_call_operand.vmem [shape: f32[16,1], index: 4, kind: input, shape index: {}]   ;;  %s1218_s5 = inlined_call_operand.vmem [shape: f32[16,1], index: 5, kind: input, shape index: {}]   ;;  %s1219_s6 = inlined_call_operand.vmem [shape: f32[32,128], index: 6, kind: output, shape index: {0}]   ;;  %s1220_s7 = inlined_call_operand.vmem [shape: f32[2,1,128], index: 7, kind: output, shape index: {1}]   ;;  %s1221_s8 = inlined_call_operand.vmem [shape: f32[2,1,128], index: 8, kind: output, shape index: {2}]  }
   0x1 LB: > { %s1064_s28 = sadd.s32 4294967295, %s1008_s27   ;;  %p839_p0 = scmp.ge.s32.totalorder %s1008_s27, 1  ;;  %s1008_s27 = sphi %s1058_s27, %s19_s27  }
   0x2   : > { %p268_p1 = scmp.lt.s32.totalorder %s1008_s27, 3 }
   0x4   : > { %p269_p2 = pnand %p839_p0, %p268_p1 }
   0x5   : > { %v349_v0 = vld [vmem:[%s1217_s4] sm:$0xff] (!%p269_p2)  ;;  %s840_s11 = sshll.u32 (!%p269_p2), %s1064_s28, 1  ;;  %v1010_v2 = vmov (!%p269_p2), 0   ;;  %v350_v3 = vld [vmem:[%s1217_s4 + $0x8] sm:$0xff] (!%p269_p2)  ;;  %v1011_v6 = vmov (!%p269_p2), 0.0   ;;  %v355_v8 = vlaneseq (!%p269_p2)  ;;  %v980_v9 = vld [vmem:[%s1216_s3 + $0x10] sm:$0xff] (!%p269_p2)  }
   0x6   : > { %272 = sbr.rel (%p269_p2) target bundleno = 408 (0x198), region = 44  ;;  %v351_v1 = vld [vmem:[%s1218_s5] sm:$0xff] (!%p269_p2)  ;;  %976 = vset.pattern.permute.xlu0 (!%p269_p2), %v1010_v2  ;;  %977 = vset.pattern.permute.xlu1 (!%p269_p2), %v1010_v2  ;;  %p309_p3 = scmp.lt.s32.totalorder (!%p269_p2), %s840_s11, 3  ;;  %v352_v5 = vld [vmem:[%s1218_s5 + $0x8] sm:$0xff] (!%p269_p2)  ;;  %vm1012_vm0 = vmmov (!%p269_p2), 0   ;;  %v981_v20 = vld [vmem:[%s1216_s3 + $0x18] sm:$0xff] (!%p269_p2)  }
   0x7   : > { %362 = vperm.xlu0 (!%p269_p2), %976, %v349_v0   ;;  %379 = vperm.xlu1 (!%p269_p2), %977, %v351_v1   ;;  %v978_v4 = vld [vmem:[%s1216_s3] sm:$0xff] (!%p269_p2)   ;;  %v979_v7 = vld [vmem:[%s1216_s3 + $0x8] sm:$0xff] (!%p269_p2)   ;;  %v356_v14 = vshrl.u32 (!%p269_p2), %v355_v8, 7  ;;  %v990_v27 = vld [vmem:[%s1216_s3 + $0x50] sm:$0xff] (!%p269_p2)   ;;  %p320_p4 = scmp.lt.s32.totalorder (!%p269_p2), %s1064_s28, 1 }
   0x8   : > { %919 = vmatprep.subr.bf16.mxu0 (!%p269_p2), %v1011_v6  ;;  %899 = vmatprep.subr.bf16.mxu1 (!%p269_p2), %v1011_v6  ;;  %v844_v12 = vld [vmem:[%s1214_s1] ss:$0 sm:$0xff] (!%p269_p2)  ;;  %v988_v23 = vld [vmem:[%s1216_s3 + $0x48] sm:$0xff] (!%p269_p2)   ;;  %v992_v31 = vld [vmem:[%s1216_s3 + $0x58] sm:$0xff] (!%p269_p2)  }
   0x9   : > { %920 = vmatpush3.bf16.msra.mxu0 (!%p269_p2), %v978_v4  ;;  %v845_v13 = vld [vmem:[%s1215_s2] ss:$0 sm:$0xff] (!%p269_p2)  ;;  %935 = vmatprep.mubr.msk.bf16.mxu0 (!%p269_p2), %vm1012_vm0, %v1011_v6  ;;  %vm357_vm1 = vcmp.lt.s32.totalorder (!%p269_p2), %v356_v14, 1  ;;  %v983_v30 = vld [vmem:[%s1216_s3 + $0x28] sm:$0xff] (!%p269_p2)   ;;  %v984_v32 = vld [vmem:[%s1216_s3 + $0x30] sm:$0xff] (!%p269_p2)   ;;  %vm374_vm2 = vcmp.lt.s32.totalorder (!%p269_p2), %v356_v14, 7 }
   0xa   : > { %921 = vmatprep.subr.bf16.mxu0 (!%p269_p2), %v1011_v6  ;;  %915 = vmatprep.mubr.msk.bf16.mxu1 (!%p269_p2), %vm1012_vm0, %v1011_v6  ;;  %v986_v19 = vld [vmem:[%s1216_s3 + $0x40] sm:$0xff] (!%p269_p2)   ;;  %v985_v36 = vld [vmem:[%s1216_s3 + $0x38] sm:$0xff] (!%p269_p2)   ;;  %v996_v37 = vld [vmem:[%s1216_s3 + $0x68] sm:$0xff] (!%p269_p2)  }
   0xb   : > { %367 = vperm.xlu0 (!%p269_p2), %976, %v350_v3   ;;  %384 = vperm.xlu1 (!%p269_p2), %977, %v352_v5   ;;  %v982_v24 = vld [vmem:[%s1216_s3 + $0x20] sm:$0xff] (!%p269_p2)   ;;  %v998_v40 = vld [vmem:[%s1216_s3 + $0x70] sm:$0xff] (!%p269_p2)   ;;  %v1000_v41 = vld [vmem:[%s1216_s3 + $0x78] sm:$0xff] (!%p269_p2)  }
   0xc   : > { %900 = vmatpush3.bf16.msra.mxu1 (!%p269_p2), %v986_v19  ;;  %v994_v33 = vld [vmem:[%s1216_s3 + $0x60] sm:$0xff] (!%p269_p2)   ;;  %v989_v54 = vld [vmem:[%s1216_s3 + $0x88] sm:$0xff] (!%p269_p2)   ;;  %v991_v55 = vld [vmem:[%s1216_s3 + $0x90] sm:$0xff] (!%p269_p2)  }
   0xd   : > { %s1223_s11 = smov (!%p309_p3, %s840_s11), 3  ;;  %922 = vmatpush3.bf16.msra.mxu0 %v979_v7  ;;  %901 = vmatprep.subr.bf16.mxu1 %v1011_v6  ;;  %v987_v51 = vld [vmem:[%s1216_s3 + $0x80] sm:$0xff]   ;;  %v993_v56 = vld [vmem:[%s1216_s3 + $0x98] sm:$0xff]   ;;  %v997_v58 = vld [vmem:[%s1216_s3 + $0xa8] sm:$0xff]   ;;  %s1225_s28 = smov (!%p320_p4, %s1064_s28), 1 }
   0xe   : > { %s841_s20 = sshll.u32 %s1223_s11, 3  ;;  %923 = vmatprep.subr.bf16.mxu0 %v1011_v6  ;;  %v995_v57 = vld [vmem:[%s1216_s3 + $0xa0] sm:$0xff]   ;;  %v999_v59 = vld [vmem:[%s1216_s3 + $0xb0] sm:$0xff]   ;;  %v1001_v60 = vld [vmem:[%s1216_s3 + $0xb8] sm:$0xff]   ;;  %s322_s21 = scalar_lea.vmem %s1220_s7, %s1225_s28 }
   0xf   : > { %s312_s23 = scalar_lea.vmem %s1213_s0, %s841_s20  ;;  %s318_s19 = scalar_lea.vmem %s1219_s6, %s841_s20 }
  0x10   : > { %v327_v10 = vld [vmem:[%s312_s23] sm:$0xff]  ;;  %v328_v11 = vld [vmem:[%s312_s23 + $0x8] sm:$0xff]  ;;  %902 = vmatpush3.bf16.msra.mxu1 %v988_v23  ;;  %s325_s24 = scalar_lea.vmem %s1221_s8, %s1225_s28 }
  0x11   : > { %v336_v15 = vmul.f32 %v844_v12, %v327_v10  ;;  %v337_v16 = vmul.f32 %v844_v12, %v328_v11  ;;  %924 = vmatpush3.bf16.msra.mxu0 %v980_v9  ;;  %903 = vmatprep.subr.bf16.mxu1 %v1011_v6 }
  0x12   : > { %925 = vmatprep.subr.bf16.mxu0 %v1011_v6 }
  0x13   : > { %v345_v17 = vadd.f32 %v845_v13, %v336_v15  ;;  %v346_v18 = vadd.f32 %v845_v13, %v337_v16 }
  0x14   : > { %904 = vmatpush3.bf16.msra.mxu1 %v990_v27 }
  0x15   : > { %v347_v21 = vmax.f32 %v345_v17, 0.0  ;;  %v348_v22 = vmax.f32 %v346_v18, 0.0  ;;  %926 = vmatpush3.bf16.msra.mxu0 %v981_v20  ;;  %905 = vmatprep.subr.bf16.mxu1 %v1011_v6 }
  0x16   : > { %927 = vmatprep.subr.bf16.mxu0 %v1011_v6 }
  0x17   : > { %v353_v25 = vrot.slane %v347_v21, 7  ;;  %v354_v26 = vrot.slane %v348_v22, 7  ;;  %v372_v34 = vrot.slane %v347_v21, 1  ;;  %v373_v35 = vrot.slane %v348_v22, 1 }
  0x18   : > { %906 = vmatpush3.bf16.msra.mxu1 %v992_v31  ;;  %v406_v42 = vpack.c.bf16 %v348_v22, %v347_v21 }
  0x19   : > { %v359_v28 = vsel %vm357_vm1, %v354_v26, %v353_v25  ;;  %v358_v29 = vsel %vm357_vm1, %v353_v25, %v354_v26  ;;  %928 = vmatpush3.bf16.msra.mxu0 %v982_v24  ;;  %907 = vmatprep.subr.bf16.mxu1 %v1011_v6  ;;  %v375_v38 = vsel %vm374_vm2, %v372_v34, %v373_v35 }
  0x1a   : > { %929 = vmatprep.subr.bf16.mxu0 %v1011_v6  ;;  %v376_v39 = vsel %vm374_vm2, %v373_v35, %v372_v34 }
  0x1c   : > { %908 = vmatpush3.bf16.msra.mxu1 %v994_v33 }
  0x1d   : > { %930 = vmatpush3.bf16.msra.mxu0 %v983_v30  ;;  %909 = vmatprep.subr.bf16.mxu1 %v1011_v6 }
  0x1e   : > { %931 = vmatprep.subr.bf16.mxu0 %v1011_v6 }
  0x20   : > { %910 = vmatpush3.bf16.msra.mxu1 %v996_v37 }
  0x21   : > { %932 = vmatpush3.bf16.msra.mxu0 %v984_v32  ;;  %911 = vmatprep.subr.bf16.mxu1 %v1011_v6 }
  0x22   : > { %933 = vmatprep.subr.bf16.mxu0 %v1011_v6 }
  0x24   : > { %912 = vmatpush3.bf16.msra.mxu1 %v998_v40 }
  0x25   : > { %934 = vmatpush3.bf16.msra.mxu0 %v985_v36  ;;  %913 = vmatprep.subr.bf16.mxu1 %v1011_v6 }
  0x26   : > { %939 = vmatprep.subr.bf16.mxu0 %v1011_v6 }
  0x28   : > { %914 = vmatpush3.bf16.msra.mxu1 %v1000_v41 }
  0x2b   : > { %916 = vmatmul.mubr.bf16.vlgmr.msra.gmra.mrb[0].mxu1 %v406_v42 }
  0x86   : > { %v363_v43 = vpop.permute.xlu0 %362  ;;  %v380_v44 = vpop.permute.xlu1 %379 }
  0x87   : > { %v387_v45 = vmul.f32 %v380_v44, %v375_v38  ;;  %v370_v48 = vmul.f32 %v363_v43, %v359_v28 }
  0x8a   : > { %v368_v46 = vpop.permute.xlu0 %367  ;;  %v385_v47 = vpop.permute.xlu1 %384 }
  0x8b   : > { %v371_v49 = vmul.f32 %v368_v46, %v358_v29  ;;  %v388_v50 = vmul.f32 %v385_v47, %v376_v39 }
  0x8d   : > { %v389_v52 = vpack.c.bf16 %v371_v49, %v370_v48  ;;  %v601_v53 = vpack.c.bf16 %v388_v50, %v387_v45 }
  0x8f   : > { %936 = vmatmul.mubr.bf16.vlgmr.msra.gmra.mrb[0].mxu0 %v389_v52 }
  0x90   : > { %940 = vmatpush3.bf16.msra.mxu0 %v987_v51  ;;  %955 = vmatprep.mubr.msk.bf16.mxu0 %vm1012_vm0, %v1011_v6 }
  0x91   : > { %941 = vmatprep.subr.bf16.mxu0 %v1011_v6 }
  0x94   : > { %942 = vmatpush3.bf16.msra.mxu0 %v989_v54 }
  0x95   : > { %943 = vmatprep.subr.bf16.mxu0 %v1011_v6 }
  0x98   : > { %944 = vmatpush3.bf16.msra.mxu0 %v991_v55 }
  0x99   : > { %945 = vmatprep.subr.bf16.mxu0 %v1011_v6 }
  0x9c   : > { %946 = vmatpush3.bf16.msra.mxu0 %v993_v56 }
  0x9d   : > { %947 = vmatprep.subr.bf16.mxu0 %v1011_v6 }
  0xa0   : > { %948 = vmatpush3.bf16.msra.mxu0 %v995_v57 }
  0xa1   : > { %949 = vmatprep.subr.bf16.mxu0 %v1011_v6 }
  0xa4   : > { %950 = vmatpush3.bf16.msra.mxu0 %v997_v58 }
  0xa5   : > { %951 = vmatprep.subr.bf16.mxu0 %v1011_v6 }
  0xa8   : > { %952 = vmatpush3.bf16.msra.mxu0 %v999_v59 }
  0xa9   : > { %953 = vmatprep.subr.bf16.mxu0 %v1011_v6 }
  0xac   : > { %954 = vmatpush3.bf16.msra.mxu0 %v1001_v60 }
  0xaf   : > { %956 = vmatmul.mubr.bf16.vlgmr.msra.gmra.mrb[0].mxu0 %v601_v53 }
  0xfe   : > { %v505_v61 = vpop.f32.mrb[0].mxu1 }
  0xff   : > { %v917_v62 = vpop.f32.mrb[1].mxu1 }
 0x100   : > { %v508_v63 = vpop.f32.mrb[2].mxu1 }
 0x101   : > { %v918_v0 = vpop.f32.mrb[3].mxu1 }
 0x182   : > { %v700_v1 = vpop.f32.mrb[0].mxu0 }
 0x183   : > { %v959_v2 = vadd.f32 %v700_v1, %v505_v61  ;;  %v957_v3 = vpop.f32.mrb[1].mxu0 }
 0x184   : > { %v703_v4 = vpop.f32.mrb[2].mxu0 }
 0x185   : > { %709 = vst [vmem:[%s318_s19] sm:$0xff] %v959_v2  ;;  %v960_v5 = vadd.f32 %v703_v4, %v508_v63  ;;  %v958_v6 = vpop.f32.mrb[3].mxu0  ;;  %v719_v7 = vmul.f32 %v959_v2, %v959_v2 }
 0x187   : > { %710 = vst [vmem:[%s318_s19 + $0x8] sm:$0xff] %v960_v5  ;;  %v711_v8 = vadd.f32 %v960_v5, %v959_v2  ;;  %v720_v9 = vmul.f32 %v960_v5, %v960_v5 }
 0x189   : > { %v712_v10 = vrot.slane %v711_v8, 4  ;;  %v721_v11 = vadd.f32 %v720_v9, %v719_v7 }
 0x18b   : > { %v713_v12 = vadd.f32 %v712_v10, %v711_v8  ;;  %v722_v13 = vrot.slane %v721_v11, 4 }
 0x18d   : > { %v714_v14 = vrot.slane %v713_v12, 2  ;;  %v723_v15 = vadd.f32 %v722_v13, %v721_v11 }
 0x18f   : > { %v715_v16 = vadd.f32 %v714_v14, %v713_v12  ;;  %v724_v17 = vrot.slane %v723_v15, 2 }
 0x191   : > { %v716_v18 = vrot.slane %v715_v16, 1  ;;  %v725_v19 = vadd.f32 %v724_v17, %v723_v15 }
 0x193   : > { %v717_v20 = vadd.f32 %v716_v18, %v715_v16  ;;  %v726_v21 = vrot.slane %v725_v19, 1 }
 0x195   : > { %718 = vst [vmem:[%s322_s21] sm:$0x1] %v717_v20  ;;  %v727_v22 = vadd.f32 %v726_v21, %v725_v19 }
 0x197   : > { %728 = vst [vmem:[%s325_s24] sm:$0x1] %v727_v22 }
 0x198 PF: > { %s19_s27 = sadd.s32 1, %s1008_s27  }
 0x199   : > { %p16_p5 = scmp.ge.s32.totalorder %s19_s27, 4  }
 0x19b   :  { %18 = sbr.rel (!%p16_p5) target bundleno = 1 (0x1), region = 98 }

</bundles_post_ra>
